<compile_context>
chip_gen: v7x
topology: tpu7x:2x2x1
jax: 0.10.0
libtpu: 0.0.40
codegen_flags: <defaults>
</compile_context>

<pallas_src>
import functools

import jax
import jax.numpy as jnp
from jax import lax
from jax.experimental import pallas as pl
from jax.experimental.pallas import tpu as pltpu

_EPS = 1e-12  # F.normalize default eps

_MAX_VMEM_LIMIT = 48 * 1024 * 1024    # leave headroom under v7x's 64 MiB / TC
_FAST_PATH_BYTES = 10 * 1024 * 1024   # fused path keeps ~4x|W| buffered in VMEM
_REDUCE_BLOCK_CAP = 16 * 1024 * 1024  # reduction call: 2 buffered W blocks
_SCALE_BLOCK_CAP = 10 * 1024 * 1024   # scale call: 2 in + 2 out buffered blocks


def _vmem_limit(buffer_bytes):
    return int(min(_MAX_VMEM_LIMIT, max(16 * 1024 * 1024, buffer_bytes + (2 << 20))))


# --------------------------------------------------------------------------- #
# Fused fast path: whole W resident in VMEM -> 1 read + 1 write of W.
# --------------------------------------------------------------------------- #
def _fused_kernel(w_ref, u_ref, out_w_ref, sigma_ref, u_new_ref):
    w = w_ref[...]                                                    # (N, M) f32
    u = u_ref[...]                                                    # (1, M) f32

    # v = W @ u, held lane-major as (1, N): u @ W^T (MXU-native transposed-rhs).
    v = lax.dot_general(u, w, (((1,), (1,)), ((), ())),
                        preferred_element_type=jnp.float32)           # (1, N)
    v_norm = jnp.maximum(jnp.sqrt(jnp.sum(v * v, axis=1, keepdims=True)), _EPS)
    v = v * (1.0 / v_norm)

    # W^T v, lane-major (1, M): v @ W (fully native matmul layout).
    wtv = lax.dot_general(v, w, (((1,), (0,)), ((), ())),
                          preferred_element_type=jnp.float32)         # (1, M)
    # sigma = v^T W u_new == ||W^T v|| (third MXU pass eliminated; differs from the
    # einsum only in the degenerate ||W^T v|| <= eps case).
    sigma = jnp.sqrt(jnp.sum(wtv * wtv, axis=1, keepdims=True))       # (1, 1)

    u_new_ref[...] = wtv * (1.0 / jnp.maximum(sigma, _EPS))
    sigma_ref[...] = sigma
    out_w_ref[...] = w * (1.0 / sigma)                                # multiply, not divide


# --------------------------------------------------------------------------- #
# Streaming path, call 1: sequential reduction over row blocks.
# --------------------------------------------------------------------------- #
def _reduce_kernel(w_ref, u_ref, sigma_ref, inv_sigma_ref, u_new_ref,
                   u_acc_ref, vsq_ref, *, n_rows, block_rows):
    blk = pl.program_id(0)
    nblk = pl.num_programs(0)

    @pl.when(blk == 0)
    def _init():
        u_acc_ref[...] = jnp.zeros_like(u_acc_ref)
        vsq_ref[...] = jnp.zeros_like(vsq_ref)

    w = w_ref[...]                                                    # (bn, M)
    if n_rows % block_rows != 0:
        # Tail block of a non-divisible N: zero the out-of-range rows (their
        # contents are undefined) so they contribute exactly nothing. No host-side
        # padding copy, no output slice.
        rows_valid = jnp.where(blk == nblk - 1, n_rows % block_rows, block_rows)
        row_ids = lax.broadcasted_iota(jnp.int32, (block_rows, 1), 0)
        w = jnp.where(row_ids < rows_valid, w, 0.0)

    u = u_ref[...]                                                    # (1, M)

    # v_blk = W_blk @ u as a lane-major row (1, bn): u @ W_blk^T (transposed-rhs
    # matmul, MXU-native; the (bn, M) tile is never transposed/materialized).
    v = lax.dot_general(u, w, (((1,), (1,)), ((), ())),
                        preferred_element_type=jnp.float32)           # (1, bn)
    # Per-lane accumulation of v*v; single cross-lane reduce in the finalize step.
    vsq_ref[...] += v * v                                             # (1, bn)

    # u_acc += W_blk^T @ v_blk, lane-major (1, M): v @ W_blk (native layout).
    u_acc_ref[...] += lax.dot_general(v, w, (((1,), (0,)), ((), ())),
                                      preferred_element_type=jnp.float32)

    @pl.when(blk == nblk - 1)
    def _finalize():
        vsq = jnp.sum(vsq_ref[...], axis=1, keepdims=True)            # (1, 1)
        v_norm = jnp.maximum(jnp.sqrt(vsq), _EPS)
        wtv = u_acc_ref[...] * (1.0 / v_norm)                         # (1, M) == W^T v
        sigma = jnp.sqrt(jnp.sum(wtv * wtv, axis=1, keepdims=True))   # (1, 1)
        u_new_ref[...] = wtv * (1.0 / jnp.maximum(sigma, _EPS))
        sigma_ref[...] = sigma
        inv_sigma_ref[...] = 1.0 / sigma


# --------------------------------------------------------------------------- #
# Streaming path, call 2: out = W * (1/sigma); row axis "parallel" (v7x 2 TCs).
# --------------------------------------------------------------------------- #
def _scale_kernel(inv_sigma_ref, w_ref, out_w_ref):
    # Tail-block garbage rows are never written back (Pallas clips edge blocks).
    out_w_ref[...] = w_ref[...] * inv_sigma_ref[...]


def _pick_block_rows(n, m, cap_bytes, override):
    if override is not None:
        bn = min(int(override), n)
        if bn < n:
            bn = max(8, bn // 8 * 8)
        return bn
    rows_cap = max(8, (cap_bytes // (4 * m)) // 8 * 8)
    # TODO(synk): rows so wide that even 8 of them blow the VMEM budget would
    # additionally need column tiling; not needed for typical linear weights.
    return n if n <= rows_cap else rows_cap


def fp32_spectral_normed_weight(weight: jax.Array, u: jax.Array, *,
                                reduce_block_rows: int | None = None,
                                scale_block_rows: int | None = None,
                                force_streaming: bool = False):
    """Returns (weight / sigma, sigma, u_new).

    `sigma` mirrors `self.net.spectral_norm.data.copy_(sigma)` and `u_new` mirrors
    the in-place `u` power-iteration buffer update done in training mode.
    """
    weight = weight.astype(jnp.float32)
    u = u.astype(jnp.float32)
    n, m = weight.shape
    u2d = u.reshape(1, m)
    w_bytes = 4 * n * m

    # ---------------- Fused fast path: W fits in VMEM ---------------- #
    if not force_streaming and w_bytes <= _FAST_PATH_BYTES:
        out_w, sigma, u_new = pl.pallas_call(
            _fused_kernel,
            out_shape=(
                jax.ShapeDtypeStruct((n, m), jnp.float32),
                jax.ShapeDtypeStruct((1, 1), jnp.float32),
                jax.ShapeDtypeStruct((1, m), jnp.float32),
            ),
            grid=(1,),
            in_specs=[
                pl.BlockSpec((n, m), lambda i: (0, 0)),
                pl.BlockSpec((1, m), lambda i: (0, 0)),
            ],
            out_specs=(
                pl.BlockSpec((n, m), lambda i: (0, 0)),
                pl.BlockSpec((1, 1), lambda i: (0, 0)),
                pl.BlockSpec((1, m), lambda i: (0, 0)),
            ),
            compiler_params=pltpu.CompilerParams(
                dimension_semantics=("arbitrary",),
                vmem_limit_bytes=_vmem_limit(4 * w_bytes + 16 * m),
            ),
        )(weight, u2d)
        return out_w, sigma[0, 0], u_new.reshape(m)

    # ---------------- Streaming path: reduction + parallel scale ---------------- #
    # Call 1: sequential reduction over row blocks (no W-sized output -> only two
    # buffered W blocks, so blocks can be ~16 MiB even on v7x).
    bn_r = _pick_block_rows(n, m, _REDUCE_BLOCK_CAP, reduce_block_rows)
    nblk_r = pl.cdiv(n, bn_r)
    red_block_bytes = 4 * bn_r * m

    sigma, inv_sigma, u_new = pl.pallas_call(
        functools.partial(_reduce_kernel, n_rows=n, block_rows=bn_r),
        out_shape=(
            jax.ShapeDtypeStruct((1, 1), jnp.float32),   # sigma
            jax.ShapeDtypeStruct((1, 1), jnp.float32),   # 1 / sigma
            jax.ShapeDtypeStruct((1, m), jnp.float32),   # updated u
        ),
        grid=(nblk_r,),
        in_specs=[
            pl.BlockSpec((bn_r, m), lambda i: (i, 0)),   # W row block (streamed)
            pl.BlockSpec((1, m), lambda i: (0, 0)),      # u, resident
        ],
        out_specs=(
            pl.BlockSpec((1, 1), lambda i: (0, 0)),
            pl.BlockSpec((1, 1), lambda i: (0, 0)),
            pl.BlockSpec((1, m), lambda i: (0, 0)),
        ),
        scratch_shapes=[
            pltpu.VMEM((1, m), jnp.float32),     # u_acc = sum_blk W_blk^T v_blk
            pltpu.VMEM((1, bn_r), jnp.float32),  # per-lane sum of v^2
        ],
        compiler_params=pltpu.CompilerParams(
            dimension_semantics=("arbitrary",),
            vmem_limit_bytes=_vmem_limit(2 * red_block_bytes + 16 * m + 4 * bn_r),
        ),
    )(weight, u2d)

    # Call 2: W * (1/sigma).  "parallel" lets the row blocks shard across both
    # TensorCores on v7x; edge block writeback is clipped automatically.
    bn_s = _pick_block_rows(n, m, _SCALE_BLOCK_CAP, scale_block_rows)
    nblk_s = pl.cdiv(n, bn_s)
    scale_block_bytes = 4 * bn_s * m

    out_w = pl.pallas_call(
        _scale_kernel,
        out_shape=jax.ShapeDtypeStruct((n, m), jnp.float32),
        grid=(nblk_s,),
        in_specs=[
            pl.BlockSpec((1, 1), lambda i: (0, 0)),      # 1/sigma, resident
            pl.BlockSpec((bn_s, m), lambda i: (i, 0)),   # W row block
        ],
        out_specs=pl.BlockSpec((bn_s, m), lambda i: (i, 0)),
        compiler_params=pltpu.CompilerParams(
            dimension_semantics=("parallel",),
            vmem_limit_bytes=_vmem_limit(4 * scale_block_bytes),
        ),
    )(inv_sigma, weight)

    return out_w, sigma[0, 0], u_new.reshape(m)


def _reference(weight, u):
    """Pure-JAX reference mirroring the PyTorch forward."""
    v = weight @ u
    v = v / jnp.maximum(jnp.linalg.norm(v), _EPS)
    u_new = weight.T @ v
    u_new = u_new / jnp.maximum(jnp.linalg.norm(u_new), _EPS)
    sigma = jnp.einsum("c,cd,d->", v, weight, u_new)
    return weight / sigma, sigma, u_new


if __name__ == "__main__":
    key = jax.random.PRNGKey(0)

    def run_case(n, m, **kw):
        k_w, k_u = jax.random.split(jax.random.fold_in(key, n * 1000 + m))
        w = jax.random.normal(k_w, (n, m), dtype=jnp.float32) * 0.05
        u0 = jax.random.normal(k_u, (m,), dtype=jnp.float32)
        u0 = u0 / jnp.linalg.norm(u0)

        out_w, sigma, u_new = fp32_spectral_normed_weight(w, u0, **kw)
        jax.block_until_ready((out_w, sigma, u_new))

        ref_w, ref_sigma, ref_u = _reference(w, u0)
        assert out_w.shape == w.shape
        assert jnp.allclose(out_w, ref_w, atol=1e-5, rtol=1e-5)
        assert jnp.allclose(sigma, ref_sigma, atol=1e-5, rtol=1e-5)
        assert jnp.allclose(u_new, ref_u, atol=1e-5, rtol=1e-5)

    # nn.Linear(in_features=64, out_features=32) style weight + power-iter u.
    run_case(32, 64)                                   # fused fast path
    run_case(37, 64)                                   # fast path, N % 8 != 0 (full-dim block)
    run_case(48, 96, force_streaming=True,             # multi-block reduction + parallel scale
             reduce_block_rows=16, scale_block_rows=16)
    run_case(37, 64, force_streaming=True,             # masked tail block + clipped writeback
             reduce_block_rows=8, scale_block_rows=8)
    print("KERNEL_OK")
</pallas_src>

<mosaic_0001>
module attributes {stable_mosaic.version = 11 : i64} {
  func.func @_fused_kernel(%arg0: i32, %arg1: memref<32x64xf32, #tpu.memory_space<vmem>>, %arg2: memref<1x64xf32, #tpu.memory_space<vmem>>, %arg3: memref<32x64xf32, #tpu.memory_space<vmem>>, %arg4: memref<1x1xf32, #tpu.memory_space<vmem>>, %arg5: memref<1x64xf32, #tpu.memory_space<vmem>>) attributes {dimension_semantics = [#tpu.dimension_semantics<arbitrary>], iteration_bounds = array<i64: 1>, scalar_prefetch = 0 : i64, scratch_operands = 0 : i64, tpu.core_type = #tpu.core_type<tc>, window_params = [{pipeline_mode = #tpu.pipeline_mode<synchronous>, transform_indices = @transform_0, window_bounds = array<i64: 32, 64>}, {pipeline_mode = #tpu.pipeline_mode<synchronous>, transform_indices = @transform_1, window_bounds = array<i64: 1, 64>}, {pipeline_mode = #tpu.pipeline_mode<synchronous>, transform_indices = @transform_2, window_bounds = array<i64: 32, 64>}, {pipeline_mode = #tpu.pipeline_mode<synchronous>, transform_indices = @transform_3, window_bounds = array<i64: 1, 1>}, {pipeline_mode = #tpu.pipeline_mode<synchronous>, transform_indices = @transform_4, window_bounds = array<i64: 1, 64>}]} {
    %c0 = arith.constant 0 : index
    %c0_0 = arith.constant 0 : index
    %0 = vector.load %arg1[%c0, %c0_0] : memref<32x64xf32, #tpu.memory_space<vmem>>, vector<32x64xf32>
    %c0_1 = arith.constant 0 : index
    %c0_2 = arith.constant 0 : index
    %1 = vector.load %arg2[%c0_1, %c0_2] : memref<1x64xf32, #tpu.memory_space<vmem>>, vector<1x64xf32>
    %cst = arith.constant dense<0.000000e+00> : vector<1x32xf32>
    %2 = tpu.matmul %1, %0, %cst {dimension_numbers = #tpu.dot_dimension_numbers<[1], [1], [0], [0], [0, 0, 1, 0], [], []>} : vector<1x64xf32>, vector<32x64xf32>, vector<1x32xf32> -> vector<1x32xf32>
    %3 = arith.mulf %2, %2 : vector<1x32xf32>
    %cst_3 = arith.constant dense<0.000000e+00> : vector<1xf32>
    %4 = vector.multi_reduction <add>, %3, %cst_3 [1] : vector<1x32xf32> to vector<1xf32>
    %5 = vector.shape_cast %4 : vector<1xf32> to vector<1x1xf32>
    %6 = math.sqrt %5 : vector<1x1xf32>
    %cst_4 = arith.constant 9.99999996E-13 : f32
    %7 = vector.broadcast %cst_4 : f32 to vector<1x1xf32>
    %8 = arith.maximumf %6, %7 : vector<1x1xf32>
    %cst_5 = arith.constant 1.000000e+00 : f32
    %9 = vector.broadcast %cst_5 : f32 to vector<1x1xf32>
    %10 = arith.divf %9, %8 : vector<1x1xf32>
    %11 = vector.broadcast %10 : vector<1x1xf32> to vector<1x32xf32>
    %12 = arith.mulf %2, %11 : vector<1x32xf32>
    %cst_6 = arith.constant dense<0.000000e+00> : vector<1x64xf32>
    %13 = tpu.matmul %12, %0, %cst_6 {dimension_numbers = #tpu.dot_dimension_numbers<[1], [0], [0], [1], [0, 0, 1, 1], [], []>} : vector<1x32xf32>, vector<32x64xf32>, vector<1x64xf32> -> vector<1x64xf32>
    %14 = arith.mulf %13, %13 : vector<1x64xf32>
    %cst_7 = arith.constant dense<0.000000e+00> : vector<1xf32>
    %15 = vector.multi_reduction <add>, %14, %cst_7 [1] : vector<1x64xf32> to vector<1xf32>
    %16 = vector.shape_cast %15 : vector<1xf32> to vector<1x1xf32>
    %17 = math.sqrt %16 : vector<1x1xf32>
    %cst_8 = arith.constant 9.99999996E-13 : f32
    %18 = vector.broadcast %cst_8 : f32 to vector<1x1xf32>
    %19 = arith.maximumf %17, %18 : vector<1x1xf32>
    %cst_9 = arith.constant 1.000000e+00 : f32
    %20 = vector.broadcast %cst_9 : f32 to vector<1x1xf32>
    %21 = arith.divf %20, %19 : vector<1x1xf32>
    %22 = vector.broadcast %21 : vector<1x1xf32> to vector<1x64xf32>
    %23 = arith.mulf %13, %22 : vector<1x64xf32>
    %c0_10 = arith.constant 0 : index
    %c0_11 = arith.constant 0 : index
    %24 = vector.load %arg5[%c0_10, %c0_11] : memref<1x64xf32, #tpu.memory_space<vmem>>, vector<1x64xf32>
    tpu.vector_store %arg5[%c0_10, %c0_11], %23 {strides = array<i32>} : memref<1x64xf32, #tpu.memory_space<vmem>>, vector<1x64xf32>,
    %c0_12 = arith.constant 0 : index
    %c0_13 = arith.constant 0 : index
    %25 = vector.load %arg4[%c0_12, %c0_13] : memref<1x1xf32, #tpu.memory_space<vmem>>, vector<1x1xf32>
    tpu.vector_store %arg4[%c0_12, %c0_13], %17 {strides = array<i32>} : memref<1x1xf32, #tpu.memory_space<vmem>>, vector<1x1xf32>,
    %cst_14 = arith.constant 1.000000e+00 : f32
    %26 = vector.broadcast %cst_14 : f32 to vector<1x1xf32>
    %27 = arith.divf %26, %17 : vector<1x1xf32>
    %28 = vector.broadcast %27 : vector<1x1xf32> to vector<32x64xf32>
    %29 = arith.mulf %0, %28 : vector<32x64xf32>
    %c0_15 = arith.constant 0 : index
    %c0_16 = arith.constant 0 : index
    %30 = vector.load %arg3[%c0_15, %c0_16] : memref<32x64xf32, #tpu.memory_space<vmem>>, vector<32x64xf32>
    tpu.vector_store %arg3[%c0_15, %c0_16], %29 {strides = array<i32>} : memref<32x64xf32, #tpu.memory_space<vmem>>, vector<32x64xf32>,
    return
  }
  func.func @transform_0(%arg0: i32) -> (i32, i32) {
    %c0_i32 = arith.constant 0 : i32
    %c0_i32_0 = arith.constant 0 : i32
    %c0_i32_1 = arith.constant 0 : i32
    return %c0_i32, %c0_i32_0 : i32, i32
  }
  func.func @transform_1(%arg0: i32) -> (i32, i32) {
    %c0_i32 = arith.constant 0 : i32
    %c0_i32_0 = arith.constant 0 : i32
    %c0_i32_1 = arith.constant 0 : i32
    return %c0_i32, %c0_i32_0 : i32, i32
  }
  func.func @transform_2(%arg0: i32) -> (i32, i32) {
    %c0_i32 = arith.constant 0 : i32
    %c0_i32_0 = arith.constant 0 : i32
    %c0_i32_1 = arith.constant 0 : i32
    return %c0_i32, %c0_i32_0 : i32, i32
  }
  func.func @transform_3(%arg0: i32) -> (i32, i32) {
    %c0_i32 = arith.constant 0 : i32
    %c0_i32_0 = arith.constant 0 : i32
    %c0_i32_1 = arith.constant 0 : i32
    return %c0_i32, %c0_i32_0 : i32, i32
  }
  func.func @transform_4(%arg0: i32) -> (i32, i32) {
    %c0_i32 = arith.constant 0 : i32
    %c0_i32_0 = arith.constant 0 : i32
    %c0_i32_1 = arith.constant 0 : i32
    return %c0_i32, %c0_i32_0 : i32, i32
  }
}

</mosaic_0001>

<bundles_post_ra>
// kernel: tpu_custom_call.1
= control target key start
LH: loop header
LB: loop body
LE: loop exit
PB: predicated region body
PF: predicated region fallthrough
CT: control target
= control target key end

     0   :  { %10 = vsyncpa [#allocation3], 0  ;;  %s577_s0 = inlined_call_operand.hbm [shape: f32[32,64], index: 0, kind: input, shape index: {}]   ;;  %s578_s1 = inlined_call_operand.vmem [shape: f32[1,64], index: 1, kind: input, shape index: {}]   ;;  %s579_s2 = inlined_call_operand.hbm [shape: f32[32,64], index: 2, kind: output, shape index: {0}]   ;;  %s580_s3 = inlined_call_operand.hbm [shape: f32[1,1], index: 3, kind: output, shape index: {1}]   ;;  %s581_s4 = inlined_call_operand.hbm [shape: f32[1,64], index: 4, kind: output, shape index: {2}]  }
   0x1   :  { %11 = vsyncpa [#allocation4], 0 }
   0x2   :  { %12 = vsyncpa [#allocation7], 0  ;;  %s453_s15 = smov [#allocation2]   ;;  %s359_s19 = scalar_lea.hbm %s577_s0, 512 }
   0x3   :  { %s18_s16 = sshll.u32 %s453_s15, 4  ;;  %p360_p0 = scmp.ne.s32.totalorder %s577_s0, %s359_s19  ;;  %s19_s16 = int_to_ptr.vmem [resolvable:$true] %s18_s16 }
   0x4   :  { %p363_p1 = scmp.lt.u32.totalorder %s359_s19, %s577_s0 }
   0x6   :  { %p365_p2 = pnand %p363_p1, %p360_p0 }
   0x8   :  { %368 = shalt.err (!%p365_p2)
}
   0x9   :  { %s369_s24 = scalar_lea.vmem %s19_s16, 512  ;;  %p374_p4 = scmp.lt.s32.totalorder %s19_s16, %s19_s16 }
   0xa   :  { %p370_p3 = scmp.ne.s32.totalorder %s19_s16, %s369_s24  ;;  %p375_p5 = scmp.lt.s32.totalorder %s369_s24, %s369_s24 }
   0xc   :  { %p376_p6 = por %p375_p5, %p374_p4 }
   0xe   :  { %p377_p7 = pnand %p376_p6, %p370_p3 }
  0x10   :  { %380 = shalt.err (!%p377_p7)
}
  0x11   :  { %s454_s25 = smov 128   ;;  %s455_s26 = smov 8  }
  0x12   :  { %24 = dma.hbm_to_vmem [thread:$0]  %s577_s0, 512, %s19_s16, [#allocation3], %s454_s25, %s454_s25, %s455_s26  }
  0x13   :  { %447 = dma.done.wait [#allocation3], 512  }
  0x14   :  { %448 = vsyncadd [#allocation3], 4294966784  ;;  %v456_v0 = vmov 0.0|0.0   ;;  %vm457_vm0 = vmmov 0   ;;  %v458_v1 = vmov 0.0   ;;  %vm35_vm1 = vcmask 523264  }
  0x15   :  { %326 = vmatprep.subr.bf16.mxu0 %v456_v0  ;;  %312 = vmatprep.mubr.msk.f32.mxu0 %vm457_vm0, %v458_v1  ;;  %v502_v2 = vld [vmem:[#allocation2] sm:$0xff]  ;;  %v504_v3 = vld [vmem:[#allocation2 + $0x8] sm:$0xff]  ;;  %vm328_vm2 = vmpackc.low %vm35_vm1, %vm35_vm1  ;;  %vm122_vm3 = vcmask 253952   ;;  %vm137_vm6 = vcmask 261120   ;;  %vm212_vm7 = vcmask 516096   ;;  %vm228_vm9 = vcmask 0  }
  0x16   :  { %334 = vmatprep.subr.bf16.mxu1 %v456_v0  ;;  %323 = vmatprep.mubr.msk.f32.mxu1 %vm457_vm0, %v458_v1  ;;  %v327_v4 = vpack.c.bf16 %v504_v3, %v502_v2  ;;  %v510_v5 = vld [vmem:[#allocation2 + $0x10] sm:$0xff]  ;;  %v512_v6 = vld [vmem:[#allocation2 + $0x18] sm:$0xff]  ;;  %v34_v8 = vld [vmem:[%s578_s1] sm:$0x1]  ;;  %s459_s1 = smov [#allocation6]   ;;  %v232_v32 = vlaneseq }
  0x17   :  { %v331_v7 = vpack.c.bf16 %v512_v6, %v510_v5  ;;  %s262_s30 = sshll.u32 %s459_s1, 4  ;;  %s263_s30 = int_to_ptr.vmem [resolvable:$true] %s262_s30 }
  0x18   :  { %329 = vmatpush3.bf16.xpose.msk.msra.mxu0 %vm328_vm2, %v327_v4  ;;  %336 = vmatpush3.bf16.msra.mxu1 %v327_v4  ;;  %s381_s5 = scalar_lea.vmem %s263_s30, 16  ;;  %s385_s6 = scalar_lea.vmem %s263_s30, 32 }
  0x19   :  { %330 = vmatprep.subr.bf16.mxu0 %v456_v0  ;;  %337 = vmatprep.subr.bf16.mxu1 %v456_v0  ;;  %p382_p8 = scmp.ne.s32.totalorder %s263_s30, %s381_s5  ;;  %p386_p9 = scmp.lt.s32.totalorder %s263_s30, %s263_s30 }
  0x1a   :  { %p387_p10 = scmp.lt.s32.totalorder %s385_s6, %s381_s5 }
  0x1c   :  { %339 = vmatpush3.bf16.msra.mxu1 %v331_v7  ;;  %p388_p11 = por %p387_p10, %p386_p9 }
  0x1e   :  { %p389_p12 = pnand %p388_p11, %p382_p8 }
  0x20   :  { %333 = vmatpush3.bf16.xpose.msk.msra.mxu0 %vm328_vm2, %v331_v7 }
  0x27   :  { %313 = vmatmul.mubr.msk.f32.vlgmr.msra.gmra.mrb[0].mxu0 %vm35_vm1, %v34_v8 }
  0xfa   :  { %v117_v9 = vpop.f32.mrb[0].mxu0 }
  0xfb   :  { %v314_v10 = vpop.f32.mrb[1].mxu0  ;;  %v121_v11 = vmul.f32 %v117_v9, %v117_v9 }
  0xfd   :  { %v123_v12 = vsel %vm122_vm3, %v121_v11, 0.0 }
  0xfe   :  { %124 = vadd.xlane.f32.xlu0 %v123_v12 }
 0x18b   :  { %v125_v13 = vpop.xlane.xlu0 %124 }
 0x18c   :  { %349 = vrsqrt.f32 %v125_v13  ;;  %vm128_vm4 = vcmp.eq.f32.partialorder %v125_v13, inf  ;;  %v131_v16 = vand.u32 2147483648, %v125_v13  ;;  %vm130_vm5 = vcmp.eq.f32.partialorder %v125_v13, 0.0 }
 0x196   :  { %v350_v14 = vpop.eup %349 }
 0x197   :  { %v127_v15 = vmul.f32 %v350_v14, %v125_v13 }
 0x199   :  { %v129_v17 = vsel %vm128_vm4, %v125_v13, %v127_v15 }
 0x19a   :  { %v132_v18 = vsel %vm130_vm5, %v131_v16, %v129_v17 }
 0x19b   :  { %v133_v19 = vmax.f32 %v132_v18, 1e-12 }
 0x19d   :  { %351 = vrcp.f32 %v133_v19 }
 0x1a7   :  { %v352_v20 = vpop.eup %351 }
 0x1a8   :  { %v136_v21 = vmul.f32 %v352_v20, %v117_v9 }
 0x1aa   :  { %324 = vmatmul.mubr.msk.f32.vlgmr.msra.gmra.mrb[0].mxu1 %vm137_vm6, %v136_v21 }
 0x27d   :  { %v207_v22 = vpop.f32.mrb[0].mxu1 }
 0x27e   :  { %v211_v23 = vmul.f32 %v207_v22, %v207_v22  ;;  %v325_v24 = vpop.f32.mrb[1].mxu1 }
 0x280   :  { %v213_v25 = vsel %vm212_vm7, %v211_v23, 0.0 }
 0x281   :  { %214 = vadd.xlane.f32.xlu0 %v213_v25 }
 0x30e   :  { %v215_v26 = vpop.xlane.xlu0 %214 }
 0x30f   :  { %353 = vrsqrt.f32 %v215_v26  ;;  %vm218_vm8 = vcmp.eq.f32.partialorder %v215_v26, inf  ;;  %v221_v29 = vand.u32 2147483648, %v215_v26  ;;  %vm220_vm10 = vcmp.eq.f32.partialorder %v215_v26, 0.0 }
 0x319   :  { %v354_v27 = vpop.eup %353 }
 0x31a   :  { %v217_v28 = vmul.f32 %v354_v27, %v215_v26 }
 0x31c   :  { %v219_v30 = vsel %vm218_vm8, %v215_v26, %v217_v28 }
 0x31d   :  { %v222_v31 = vsel %vm220_vm10, %v221_v29, %v219_v30 }
 0x31e   :  { %v223_v33 = vmax.f32 %v222_v31, 1e-12  ;;  %229 = vst.msk [vmem:[#allocation6] sm:$0x1] %vm228_vm9, %v222_v31  ;;  %355 = vrcp.f32 %v222_v31 }
 0x31f   :  { %392 = shalt.err (!%p389_p12)
}
 0x320   :  { %s393_s9 = scalar_lea.hbm %s580_s3, 16 }
 0x321   :  { %p394_p13 = scmp.ne.s32.totalorder %s580_s3, %s393_s9  ;;  %p397_p0 = scmp.lt.u32.totalorder %s393_s9, %s580_s3 }
 0x323   :  { %p399_p1 = pnand %p397_p0, %p394_p13 }
 0x325   :  { %402 = shalt.err (!%p399_p1)
}
 0x326   :  { %265 = dma.vmem_to_hbm [thread:$0]  %s263_s30, 16, %s580_s3, [#allocation7]   ;;  %357 = vrcp.f32 %v223_v33  ;;  %v233_v34 = vshrl.u32 %v232_v32, 7 }
 0x327   :  { %s460_s16 = smov [#allocation5]   ;;  %s461_s18 = smov [#allocation8]  }
 0x328   :  { %v234_v35 = vsub.s32 0, %v233_v34  ;;  %v356_v36 = vpop.eup %355  ;;  %s249_s17 = sshll.u32 %s460_s16, 4  ;;  %s272_s19 = sshll.u32 %s461_s18, 4  ;;  %s250_s17 = int_to_ptr.vmem [resolvable:$true] %s249_s17  ;;  %s537_s19 = int_to_ptr.vmem [resolvable:$true] %s272_s19 }
 0x329   :  { %s403_s3 = scalar_lea.vmem %s250_s17, 512  ;;  %p408_p3 = scmp.lt.s32.totalorder %s250_s17, %s250_s17 }
 0x32a   :  { %v235_v37 = vrot.slane %v356_v36, %v234_v35  ;;  %p404_p2 = scmp.ne.s32.totalorder %s250_s17, %s403_s3  ;;  %p409_p4 = scmp.lt.s32.totalorder %s403_s3, %s403_s3 }
 0x32c   :  { %v236_v39 = vmul.f32 %v235_v37, %v502_v2  ;;  %v237_v40 = vmul.f32 %v235_v37, %v504_v3  ;;  %v238_v41 = vmul.f32 %v235_v37, %v510_v5  ;;  %v239_v42 = vmul.f32 %v235_v37, %v512_v6  ;;  %p410_p5 = por %p409_p4, %p408_p3 }
 0x32e   :  { %240 = vst.msk [vmem:[#allocation5] sm:$0xff] %vm35_vm1, %v236_v39  ;;  %241 = vst.msk [vmem:[#allocation5 + $0x8] sm:$0xff] %vm35_vm1, %v237_v40  ;;  %p411_p6 = pnand %p410_p5, %p404_p2 }
 0x32f   :  { %242 = vst.msk [vmem:[#allocation5 + $0x10] sm:$0xff] %vm35_vm1, %v238_v41  ;;  %243 = vst.msk [vmem:[#allocation5 + $0x18] sm:$0xff] %vm35_vm1, %v239_v42 }
 0x330   :  { %v358_v38 = vpop.eup %357 }
 0x331   :  { %v226_v43 = vmul.f32 %v358_v38, %v207_v22 }
 0x332   :  { %414 = shalt.err (!%p411_p6)
}
 0x333   :  { %s415_s22 = scalar_lea.hbm %s579_s2, 512 }
 0x334   :  { %p416_p7 = scmp.ne.s32.totalorder %s579_s2, %s415_s22  ;;  %p419_p8 = scmp.lt.u32.totalorder %s415_s22, %s579_s2 }
 0x336   :  { %p421_p9 = pnand %p419_p8, %p416_p7 }
 0x338   :  { %424 = shalt.err (!%p421_p9)
}
 0x339   :  { %255 = dma.vmem_to_hbm [thread:$0]  %s250_s17, 512, %s579_s2, [#allocation4], %s454_s25, %s454_s25, %s455_s26   ;;  %227 = vst.msk [vmem:[#allocation8] sm:$0x1] %vm212_vm7, %v226_v43 }
 0x33a   :  { %s425_s1 = scalar_lea.vmem %s537_s19, 16  ;;  %s429_s30 = scalar_lea.vmem %s537_s19, 32 }
 0x33b   :  { %p426_p10 = scmp.ne.s32.totalorder %s537_s19, %s425_s1  ;;  %p430_p11 = scmp.lt.s32.totalorder %s537_s19, %s537_s19 }
 0x33c   :  { %p431_p12 = scmp.lt.s32.totalorder %s429_s30, %s425_s1 }
 0x33e   :  { %p432_p13 = por %p431_p12, %p430_p11 }
 0x340   :  { %p433_p0 = pnand %p432_p13, %p426_p10 }
 0x342   :  { %436 = shalt.err (!%p433_p0)
}
 0x343   :  { %s437_s7 = scalar_lea.hbm %s581_s4, 16 }
 0x344   :  { %p438_p1 = scmp.ne.s32.totalorder %s581_s4, %s437_s7  ;;  %p441_p2 = scmp.lt.u32.totalorder %s437_s7, %s581_s4 }
 0x346   :  { %p443_p3 = pnand %p441_p2, %p438_p1 }
 0x348   :  { %446 = shalt.err (!%p443_p3)
}
 0x349   :  { %275 = dma.vmem_to_hbm [thread:$0]  %s537_s19, 16, %s581_s4, [#allocation7]  }
 0x34a   :  { %449 = dma.done.wait [#allocation4], 512  }
 0x34b   :  { %450 = vsyncadd [#allocation4], 4294966784 }
 0x34c   :  { %451 = dma.done.wait [#allocation7], 32  }
 0x34d   :  { %452 = vsyncadd [#allocation7], 4294967264 }
 0x34e   :  { %285 = vsyncpa [#allocation3], 1 }
 0x34f   :  { %286 = vsyncpa [#allocation4], 1 }
 0x350   :  { %287 = vsyncpa [#allocation7], 1 }

</bundles_post_ra>
